<compile_context>
chip_gen: v7x
topology: tpu7x:2x2x1
jax: 0.10.0
libtpu: 0.0.40
codegen_flags: <defaults>
</compile_context>

<pallas_src>
import jax
import jax.numpy as jnp
import numpy as np
from jax.experimental import pallas as pl
from jax.experimental.pallas import tpu as pltpu

COLS = 512             # lane-dense last dim (multiple of 128)
MAX_BLOCK_ROWS = 1024  # sublane rows per block (multiple of 8) -> 2 MiB/block

# Cubic B-spline basis matrix: row i = basis w_i, column p = coefficient of u^p
#   w0 = (1-u)^3/6, w1 = (3u^3-6u^2+4)/6, w2 = (-3u^3+3u^2+3u+1)/6, w3 = u^3/6
_BSPLINE_M = np.array(
    [[1.0, -3.0, 3.0, -1.0],
     [4.0, 0.0, -6.0, 3.0],
     [1.0, 3.0, 3.0, -3.0],
     [0.0, 0.0, 0.0, 1.0]], dtype=np.float32) / 6.0


def _cdiv(a, b):
    return -(-a // b)


def _round_up(a, b):
    return ((a + b - 1) // b) * b


# ----------------------------------------------------------------------------
# Coefficient table (plain JAX, tiny): for each interval index k, the cubic
# polynomial coefficients of the displacement in u.
# ----------------------------------------------------------------------------
def _bspline_coeff_table(phi, ncp, support_outside):
    if support_outside:
        ks = np.arange(-3, ncp)          # clipped interval ids, ntab = ncp + 3
    else:
        ks = np.arange(0, ncp - 3)       # valid intervals only, ntab = ncp - 3
    gather_idx = np.clip(ks[:, None] + np.arange(4)[None, :], 0, ncp - 1)
    gathered = phi[gather_idx]                       # (ntab, 4)
    coeffs = gathered @ jnp.asarray(_BSPLINE_M)      # (ntab, 4): a0,a1,a2,a3
    return coeffs.reshape(-1).astype(jnp.float32)    # flat 1-D for SMEM


# ----------------------------------------------------------------------------
# Pallas kernel: x + cubic-B-spline displacement, coefficient-table gather
# ----------------------------------------------------------------------------
def _make_bspline_kernel(dx, origin, ncp, support_outside, ntab):
    inv_dx = 1.0 / float(dx)
    # Fold the "+3" interval shift into the constant:
    #   (x - origin - dx)/dx + 3 == (x - (origin - 2*dx)) * inv_dx
    shift = float(origin) - 2.0 * float(dx)
    last = 4 * (ntab - 1)

    def kernel(coef_ref, x_ref, o_ref):
        x = x_ref[...]                        # (BR, COLS) f32 z-coordinates
        tf = (x - shift) * inv_dx             # shifted interval coordinate
        idxf = jnp.floor(tf)                  # shifted interval index, f32
        # NOTE: kk == float(j) relies on floor() giving an exactly
        # representable f32 integer (|idx| << 2^24) — keep this in f32.
        u = tf - idxf
        if support_outside:
            kk = jnp.clip(idxf, 0.0, float(ncp + 2))   # table rows 0..ncp+2
        else:
            kk = idxf                                  # table row j at kk==j+3
        # Initialize to the LAST table entry, loop over ntab-1 intervals
        # (drops one compare + four selects per element).
        c0 = jnp.full_like(x, coef_ref[last + 0])
        c1 = jnp.full_like(x, coef_ref[last + 1])
        c2 = jnp.full_like(x, coef_ref[last + 2])
        c3 = jnp.full_like(x, coef_ref[last + 3])
        for j in range(ntab - 1):
            kj = float(j) if support_outside else float(j + 3)
            m = kk == kj
            base = 4 * j
            c0 = jnp.where(m, coef_ref[base + 0], c0)
            c1 = jnp.where(m, coef_ref[base + 1], c1)
            c2 = jnp.where(m, coef_ref[base + 2], c2)
            c3 = jnp.where(m, coef_ref[base + 3], c3)
        disp = ((c3 * u + c2) * u + c1) * u + c0      # Horner
        if not support_outside:
            valid = (idxf >= 3.0) & (idxf <= float(ncp - 1))
            disp = jnp.where(valid, disp, jnp.float32(jnp.nan))
        o_ref[...] = x + disp                 # fused out[..., 2] += displacement

    return kernel


def bspline_displace_add(x2_flat, coef_flat, *, dx, origin, ncp,
                         support_outside):
    """Returns x2 + displacement(x2) for a flat vector of z coordinates."""
    n = x2_flat.shape[0]
    ntab = coef_flat.shape[0] // 4

    rows = max(1, _cdiv(n, COLS))
    rows_pad = _round_up(rows, 8)             # sublane-aligned only (no block pad)
    # Aim for >= 2 grid steps (v7x dual-TC sharding) while capping each block
    # at MAX_BLOCK_ROWS (2 MiB).  The partial last block is write-masked.
    half = _round_up(_cdiv(rows_pad, 2), 8)
    block_rows = max(8, min(MAX_BLOCK_ROWS, half))
    grid = _cdiv(rows_pad, block_rows)
    n_pad = rows_pad * COLS

    x = x2_flat.astype(jnp.float32)
    if n_pad != n:
        # Small ragged-tail pad (< 8*COLS + COLS elements) with an in-support
        # coordinate so garbage lanes never produce NaNs.
        pad_val = jnp.float32(origin + 1.5 * dx)
        x = jnp.concatenate([x, jnp.full((n_pad - n,), pad_val, jnp.float32)])
    x2d = x.reshape(rows_pad, COLS)

    # TODO(synk): at ncp <= 4 (tiny ntab) the kernel can become DMA-exposed on
    # v5e; add pipeline_mode=pl.Buffered(3) on the x2 BlockSpec if profiling
    # shows wall > compute there.
    kernel = _make_bspline_kernel(dx, origin, ncp, support_outside, ntab)
    out2d = pl.pallas_call(
        kernel,
        out_shape=jax.ShapeDtypeStruct((rows_pad, COLS), jnp.float32),
        grid=(grid,),
        in_specs=[
            pl.BlockSpec(memory_space=pltpu.MemorySpace.SMEM),   # coeff table
            pl.BlockSpec((block_rows, COLS), lambda i: (i, 0)),  # x2 block
        ],
        out_specs=pl.BlockSpec((block_rows, COLS), lambda i: (i, 0)),
        compiler_params=pltpu.CompilerParams(
            dimension_semantics=("parallel",),
            vmem_limit_bytes=32 * 1024 * 1024),
    )(coef_flat, x2d)
    return out2d.reshape(-1)[:n]


# ----------------------------------------------------------------------------
# NeuralPhiX parameters (deterministic init) and tiny MLP (plain-JAX glue)
# ----------------------------------------------------------------------------
def init_params(key, ncp, width=16):
    ks = jax.random.split(key, 7)

    def lin(kw, kb, fan_in, fan_out):
        bound = 1.0 / (fan_in ** 0.5)
        w = jax.random.uniform(kw, (fan_out, fan_in), jnp.float32, -bound, bound)
        b = jax.random.uniform(kb, (fan_out,), jnp.float32, -bound, bound)
        return w, b

    w1, b1 = lin(ks[0], ks[1], 1, width)
    w2, b2 = lin(ks[2], ks[3], width, width)
    w3, b3 = lin(ks[4], ks[5], width, width)
    # xavier_uniform_ with gain=0.1, no bias
    bound = 0.1 * (6.0 / (width + ncp)) ** 0.5
    wout = jax.random.uniform(ks[6], (ncp, width), jnp.float32, -bound, bound)
    return dict(w1=w1, b1=b1, w2=w2, b2=b2, w3=w3, b3=b3, wout=wout)


def neural_phi(params, t_scalar):
    h = jnp.reshape(t_scalar, (1, 1)).astype(jnp.float32)
    h = jax.nn.selu(h @ params["w1"].T + params["b1"])
    h = jax.nn.selu(h @ params["w2"].T + params["b2"])
    h = jax.nn.selu(h @ params["w3"].T + params["b3"])
    return (h @ params["wout"].T).reshape(-1)


def _support_constants(ncp, support_range):
    if support_range is None:
        dx = 2.0 / (ncp - 3)
        origin = -1.0 - dx
    else:
        smin, smax = support_range
        dx = (smax - smin) / (ncp - 3)
        origin = smin - dx
    return dx, origin


# ----------------------------------------------------------------------------
# Module forward (weight_nn / num_control_points mode)
# ----------------------------------------------------------------------------
def bspline_temporal_deformation_forward(params, positions, times, *, ncp,
                                         support_outside=False,
                                         support_range=None):
    # TODO(synk): torch.unique(times) single-value assertion is a host-side
    # data-dependent check; here we assume all `times` entries are equal.
    t0 = times.reshape(-1)[0]
    phi = neural_phi(params, t0)                    # (ncp,)
    dx, origin = _support_constants(ncp, support_range)
    coef = _bspline_coeff_table(phi, ncp, support_outside)

    x2 = positions[..., 2].reshape(-1)
    new_x2 = bspline_displace_add(
        x2, coef, dx=dx, origin=origin, ncp=ncp,
        support_outside=support_outside)
    # TODO(synk): if the caller can keep positions SoA (z-plane contiguous),
    # the z gather / .at[..., 2].set scatter passes could be removed and the
    # kernel output aliased into the z plane via input_output_aliases.
    return positions.at[..., 2].set(new_x2.reshape(positions.shape[:-1]))


# ----------------------------------------------------------------------------
# Pure-JAX reference (no Pallas) for correctness checking
# ----------------------------------------------------------------------------
def _bspline_w(u, i):
    if i == 0:
        return (1 - u) ** 3 / 6
    if i == 1:
        return (3 * u ** 3 - 6 * u ** 2 + 4) / 6
    if i == 2:
        return (-3 * u ** 3 + 3 * u ** 2 + 3 * u + 1) / 6
    return u ** 3 / 6


def reference_forward(params, positions, times, *, ncp, support_outside=False,
                      support_range=None):
    t0 = times.reshape(-1)[0]
    phi = neural_phi(params, t0)
    dx, origin = _support_constants(ncp, support_range)
    x2 = positions[..., 2].reshape(-1)
    t = x2 - origin - dx
    idxf = jnp.floor(t / dx)
    indices = idxf.astype(jnp.int32)
    u = t / dx - idxf
    disp = jnp.zeros_like(x2)
    for i in range(4):
        idx_i = indices + i
        if support_outside:
            idx_i = jnp.clip(idx_i, 0, ncp - 1)
        disp = disp + _bspline_w(u, i) * phi[jnp.clip(idx_i, 0, ncp - 1)]
    if not support_outside:
        valid = (indices >= 0) & (indices < ncp - 3)
        disp = jnp.where(valid, disp, jnp.nan)
    return positions.at[..., 2].set((x2 + disp).reshape(positions.shape[:-1]))


if __name__ == "__main__":
    key = jax.random.PRNGKey(0)
    kp, kpos, kpos2 = jax.random.split(key, 3)

    ncp = 8                       # num_control_points
    params = init_params(kp, ncp, width=16)

    # small example: 4 rays x 512 samples, 3-D positions; one shared time.
    positions = jax.random.uniform(kpos, (4, 512, 3), jnp.float32, -1.2, 1.2)
    times = jnp.full((4, 512, 1), 0.5, dtype=jnp.float32)

    # support_outside=True path
    out = bspline_temporal_deformation_forward(
        params, positions, times, ncp=ncp, support_outside=True)
    out = jax.block_until_ready(out)
    ref = reference_forward(
        params, positions, times, ncp=ncp, support_outside=True)
    assert out.shape == positions.shape and out.dtype == jnp.float32
    assert jnp.allclose(out, ref, atol=1e-5, rtol=1e-5), "mismatch (outside=True)"

    # support_outside=False path (NaN outside support), NaN-aware compare
    out2 = bspline_temporal_deformation_forward(
        params, positions, times, ncp=ncp, support_outside=False)
    out2 = jax.block_until_ready(out2)
    ref2 = reference_forward(
        params, positions, times, ncp=ncp, support_outside=False)
    assert bool(jnp.allclose(out2, ref2, atol=1e-5, rtol=1e-5,
                             equal_nan=True)), "mismatch (outside=False)"

    # ragged size exercising the cdiv grid + partial (write-masked) last block
    positions3 = jax.random.uniform(kpos2, (3, 3447, 3), jnp.float32, -1.2, 1.2)
    times3 = jnp.full((3, 3447, 1), 0.25, dtype=jnp.float32)
    out3 = bspline_temporal_deformation_forward(
        params, positions3, times3, ncp=ncp, support_outside=True)
    out3 = jax.block_until_ready(out3)
    ref3 = reference_forward(
        params, positions3, times3, ncp=ncp, support_outside=True)
    assert jnp.allclose(out3, ref3, atol=1e-5, rtol=1e-5), "mismatch (ragged)"

    print("KERNEL_OK")
</pallas_src>

<mosaic_0001>
module attributes {stable_mosaic.version = 11 : i64} {
  func.func @kernel(%arg0: i32, %arg1: memref<44xf32, #tpu.memory_space<smem>>, %arg2: memref<8x512xf32, #tpu.memory_space<vmem>>, %arg3: memref<8x512xf32, #tpu.memory_space<vmem>>) attributes {dimension_semantics = [#tpu.dimension_semantics<parallel>], iteration_bounds = array<i64: 1>, scalar_prefetch = 0 : i64, scratch_operands = 0 : i64, tpu.core_type = #tpu.core_type<tc>, window_params = [{transform_indices = @transform_0, window_bounds = array<i64: 44>}, {transform_indices = @transform_1, window_bounds = array<i64: 8, 512>}, {transform_indices = @transform_2, window_bounds = array<i64: 8, 512>}]} {
    %c0 = arith.constant 0 : index
    %c0_0 = arith.constant 0 : index
    %0 = vector.load %arg2[%c0, %c0_0] : memref<8x512xf32, #tpu.memory_space<vmem>>, vector<8x512xf32>
    %cst = arith.constant -2.200000e+00 : f32
    %1 = vector.broadcast %cst : f32 to vector<8x512xf32>
    %2 = arith.subf %0, %1 : vector<8x512xf32>
    %cst_1 = arith.constant 2.500000e+00 : f32
    %3 = vector.broadcast %cst_1 : f32 to vector<8x512xf32>
    %4 = arith.mulf %2, %3 : vector<8x512xf32>
    %5 = math.floor %4 : vector<8x512xf32>
    %6 = arith.subf %4, %5 : vector<8x512xf32>
    %cst_2 = arith.constant 0.000000e+00 : f32
    %cst_3 = arith.constant 1.000000e+01 : f32
    %7 = vector.broadcast %cst_2 : f32 to vector<8x512xf32>
    %8 = arith.maximumf %7, %5 : vector<8x512xf32>
    %9 = vector.broadcast %cst_3 : f32 to vector<8x512xf32>
    %10 = arith.minimumf %9, %8 : vector<8x512xf32>
    %c40 = arith.constant 40 : index
    %11 = memref.load %arg1[%c40] : memref<44xf32, #tpu.memory_space<smem>>
    %12 = vector.broadcast %11 : f32 to vector<8x512xf32>
    %c41 = arith.constant 41 : index
    %13 = memref.load %arg1[%c41] : memref<44xf32, #tpu.memory_space<smem>>
    %14 = vector.broadcast %13 : f32 to vector<8x512xf32>
    %c42 = arith.constant 42 : index
    %15 = memref.load %arg1[%c42] : memref<44xf32, #tpu.memory_space<smem>>
    %16 = vector.broadcast %15 : f32 to vector<8x512xf32>
    %c43 = arith.constant 43 : index
    %17 = memref.load %arg1[%c43] : memref<44xf32, #tpu.memory_space<smem>>
    %18 = vector.broadcast %17 : f32 to vector<8x512xf32>
    %cst_4 = arith.constant 0.000000e+00 : f32
    %19 = vector.broadcast %cst_4 : f32 to vector<8x512xf32>
    %20 = arith.cmpf oeq, %10, %19 : vector<8x512xf32>
    %c0_5 = arith.constant 0 : index
    %21 = memref.load %arg1[%c0_5] : memref<44xf32, #tpu.memory_space<smem>>
    %22 = vector.broadcast %21 : f32 to vector<8x512xf32>
    %23 = arith.select %20, %22, %12 : vector<8x512xi1>, vector<8x512xf32>
    %c1 = arith.constant 1 : index
    %24 = memref.load %arg1[%c1] : memref<44xf32, #tpu.memory_space<smem>>
    %25 = vector.broadcast %24 : f32 to vector<8x512xf32>
    %26 = arith.select %20, %25, %14 : vector<8x512xi1>, vector<8x512xf32>
    %c2 = arith.constant 2 : index
    %27 = memref.load %arg1[%c2] : memref<44xf32, #tpu.memory_space<smem>>
    %28 = vector.broadcast %27 : f32 to vector<8x512xf32>
    %29 = arith.select %20, %28, %16 : vector<8x512xi1>, vector<8x512xf32>
    %c3 = arith.constant 3 : index
    %30 = memref.load %arg1[%c3] : memref<44xf32, #tpu.memory_space<smem>>
    %31 = vector.broadcast %30 : f32 to vector<8x512xf32>
    %32 = arith.select %20, %31, %18 : vector<8x512xi1>, vector<8x512xf32>
    %cst_6 = arith.constant 1.000000e+00 : f32
    %33 = vector.broadcast %cst_6 : f32 to vector<8x512xf32>
    %34 = arith.cmpf oeq, %10, %33 : vector<8x512xf32>
    %c4 = arith.constant 4 : index
    %35 = memref.load %arg1[%c4] : memref<44xf32, #tpu.memory_space<smem>>
    %36 = vector.broadcast %35 : f32 to vector<8x512xf32>
    %37 = arith.select %34, %36, %23 : vector<8x512xi1>, vector<8x512xf32>
    %c5 = arith.constant 5 : index
    %38 = memref.load %arg1[%c5] : memref<44xf32, #tpu.memory_space<smem>>
    %39 = vector.broadcast %38 : f32 to vector<8x512xf32>
    %40 = arith.select %34, %39, %26 : vector<8x512xi1>, vector<8x512xf32>
    %c6 = arith.constant 6 : index
    %41 = memref.load %arg1[%c6] : memref<44xf32, #tpu.memory_space<smem>>
    %42 = vector.broadcast %41 : f32 to vector<8x512xf32>
    %43 = arith.select %34, %42, %29 : vector<8x512xi1>, vector<8x512xf32>
    %c7 = arith.constant 7 : index
    %44 = memref.load %arg1[%c7] : memref<44xf32, #tpu.memory_space<smem>>
    %45 = vector.broadcast %44 : f32 to vector<8x512xf32>
    %46 = arith.select %34, %45, %32 : vector<8x512xi1>, vector<8x512xf32>
    %cst_7 = arith.constant 2.000000e+00 : f32
    %47 = vector.broadcast %cst_7 : f32 to vector<8x512xf32>
    %48 = arith.cmpf oeq, %10, %47 : vector<8x512xf32>
    %c8 = arith.constant 8 : index
    %49 = memref.load %arg1[%c8] : memref<44xf32, #tpu.memory_space<smem>>
    %50 = vector.broadcast %49 : f32 to vector<8x512xf32>
    %51 = arith.select %48, %50, %37 : vector<8x512xi1>, vector<8x512xf32>
    %c9 = arith.constant 9 : index
    %52 = memref.load %arg1[%c9] : memref<44xf32, #tpu.memory_space<smem>>
    %53 = vector.broadcast %52 : f32 to vector<8x512xf32>
    %54 = arith.select %48, %53, %40 : vector<8x512xi1>, vector<8x512xf32>
    %c10 = arith.constant 10 : index
    %55 = memref.load %arg1[%c10] : memref<44xf32, #tpu.memory_space<smem>>
    %56 = vector.broadcast %55 : f32 to vector<8x512xf32>
    %57 = arith.select %48, %56, %43 : vector<8x512xi1>, vector<8x512xf32>
    %c11 = arith.constant 11 : index
    %58 = memref.load %arg1[%c11] : memref<44xf32, #tpu.memory_space<smem>>
    %59 = vector.broadcast %58 : f32 to vector<8x512xf32>
    %60 = arith.select %48, %59, %46 : vector<8x512xi1>, vector<8x512xf32>
    %cst_8 = arith.constant 3.000000e+00 : f32
    %61 = vector.broadcast %cst_8 : f32 to vector<8x512xf32>
    %62 = arith.cmpf oeq, %10, %61 : vector<8x512xf32>
    %c12 = arith.constant 12 : index
    %63 = memref.load %arg1[%c12] : memref<44xf32, #tpu.memory_space<smem>>
    %64 = vector.broadcast %63 : f32 to vector<8x512xf32>
    %65 = arith.select %62, %64, %51 : vector<8x512xi1>, vector<8x512xf32>
    %c13 = arith.constant 13 : index
    %66 = memref.load %arg1[%c13] : memref<44xf32, #tpu.memory_space<smem>>
    %67 = vector.broadcast %66 : f32 to vector<8x512xf32>
    %68 = arith.select %62, %67, %54 : vector<8x512xi1>, vector<8x512xf32>
    %c14 = arith.constant 14 : index
    %69 = memref.load %arg1[%c14] : memref<44xf32, #tpu.memory_space<smem>>
    %70 = vector.broadcast %69 : f32 to vector<8x512xf32>
    %71 = arith.select %62, %70, %57 : vector<8x512xi1>, vector<8x512xf32>
    %c15 = arith.constant 15 : index
    %72 = memref.load %arg1[%c15] : memref<44xf32, #tpu.memory_space<smem>>
    %73 = vector.broadcast %72 : f32 to vector<8x512xf32>
    %74 = arith.select %62, %73, %60 : vector<8x512xi1>, vector<8x512xf32>
    %cst_9 = arith.constant 4.000000e+00 : f32
    %75 = vector.broadcast %cst_9 : f32 to vector<8x512xf32>
    %76 = arith.cmpf oeq, %10, %75 : vector<8x512xf32>
    %c16 = arith.constant 16 : index
    %77 = memref.load %arg1[%c16] : memref<44xf32, #tpu.memory_space<smem>>
    %78 = vector.broadcast %77 : f32 to vector<8x512xf32>
    %79 = arith.select %76, %78, %65 : vector<8x512xi1>, vector<8x512xf32>
    %c17 = arith.constant 17 : index
    %80 = memref.load %arg1[%c17] : memref<44xf32, #tpu.memory_space<smem>>
    %81 = vector.broadcast %80 : f32 to vector<8x512xf32>
    %82 = arith.select %76, %81, %68 : vector<8x512xi1>, vector<8x512xf32>
    %c18 = arith.constant 18 : index
    %83 = memref.load %arg1[%c18] : memref<44xf32, #tpu.memory_space<smem>>
    %84 = vector.broadcast %83 : f32 to vector<8x512xf32>
    %85 = arith.select %76, %84, %71 : vector<8x512xi1>, vector<8x512xf32>
    %c19 = arith.constant 19 : index
    %86 = memref.load %arg1[%c19] : memref<44xf32, #tpu.memory_space<smem>>
    %87 = vector.broadcast %86 : f32 to vector<8x512xf32>
    %88 = arith.select %76, %87, %74 : vector<8x512xi1>, vector<8x512xf32>
    %cst_10 = arith.constant 5.000000e+00 : f32
    %89 = vector.broadcast %cst_10 : f32 to vector<8x512xf32>
    %90 = arith.cmpf oeq, %10, %89 : vector<8x512xf32>
    %c20 = arith.constant 20 : index
    %91 = memref.load %arg1[%c20] : memref<44xf32, #tpu.memory_space<smem>>
    %92 = vector.broadcast %91 : f32 to vector<8x512xf32>
    %93 = arith.select %90, %92, %79 : vector<8x512xi1>, vector<8x512xf32>
    %c21 = arith.constant 21 : index
    %94 = memref.load %arg1[%c21] : memref<44xf32, #tpu.memory_space<smem>>
    %95 = vector.broadcast %94 : f32 to vector<8x512xf32>
    %96 = arith.select %90, %95, %82 : vector<8x512xi1>, vector<8x512xf32>
    %c22 = arith.constant 22 : index
    %97 = memref.load %arg1[%c22] : memref<44xf32, #tpu.memory_space<smem>>
    %98 = vector.broadcast %97 : f32 to vector<8x512xf32>
    %99 = arith.select %90, %98, %85 : vector<8x512xi1>, vector<8x512xf32>
    %c23 = arith.constant 23 : index
    %100 = memref.load %arg1[%c23] : memref<44xf32, #tpu.memory_space<smem>>
    %101 = vector.broadcast %100 : f32 to vector<8x512xf32>
    %102 = arith.select %90, %101, %88 : vector<8x512xi1>, vector<8x512xf32>
    %cst_11 = arith.constant 6.000000e+00 : f32
    %103 = vector.broadcast %cst_11 : f32 to vector<8x512xf32>
    %104 = arith.cmpf oeq, %10, %103 : vector<8x512xf32>
    %c24 = arith.constant 24 : index
    %105 = memref.load %arg1[%c24] : memref<44xf32, #tpu.memory_space<smem>>
    %106 = vector.broadcast %105 : f32 to vector<8x512xf32>
    %107 = arith.select %104, %106, %93 : vector<8x512xi1>, vector<8x512xf32>
    %c25 = arith.constant 25 : index
    %108 = memref.load %arg1[%c25] : memref<44xf32, #tpu.memory_space<smem>>
    %109 = vector.broadcast %108 : f32 to vector<8x512xf32>
    %110 = arith.select %104, %109, %96 : vector<8x512xi1>, vector<8x512xf32>
    %c26 = arith.constant 26 : index
    %111 = memref.load %arg1[%c26] : memref<44xf32, #tpu.memory_space<smem>>
    %112 = vector.broadcast %111 : f32 to vector<8x512xf32>
    %113 = arith.select %104, %112, %99 : vector<8x512xi1>, vector<8x512xf32>
    %c27 = arith.constant 27 : index
    %114 = memref.load %arg1[%c27] : memref<44xf32, #tpu.memory_space<smem>>
    %115 = vector.broadcast %114 : f32 to vector<8x512xf32>
    %116 = arith.select %104, %115, %102 : vector<8x512xi1>, vector<8x512xf32>
    %cst_12 = arith.constant 7.000000e+00 : f32
    %117 = vector.broadcast %cst_12 : f32 to vector<8x512xf32>
    %118 = arith.cmpf oeq, %10, %117 : vector<8x512xf32>
    %c28 = arith.constant 28 : index
    %119 = memref.load %arg1[%c28] : memref<44xf32, #tpu.memory_space<smem>>
    %120 = vector.broadcast %119 : f32 to vector<8x512xf32>
    %121 = arith.select %118, %120, %107 : vector<8x512xi1>, vector<8x512xf32>
    %c29 = arith.constant 29 : index
    %122 = memref.load %arg1[%c29] : memref<44xf32, #tpu.memory_space<smem>>
    %123 = vector.broadcast %122 : f32 to vector<8x512xf32>
    %124 = arith.select %118, %123, %110 : vector<8x512xi1>, vector<8x512xf32>
    %c30 = arith.constant 30 : index
    %125 = memref.load %arg1[%c30] : memref<44xf32, #tpu.memory_space<smem>>
    %126 = vector.broadcast %125 : f32 to vector<8x512xf32>
    %127 = arith.select %118, %126, %113 : vector<8x512xi1>, vector<8x512xf32>
    %c31 = arith.constant 31 : index
    %128 = memref.load %arg1[%c31] : memref<44xf32, #tpu.memory_space<smem>>
    %129 = vector.broadcast %128 : f32 to vector<8x512xf32>
    %130 = arith.select %118, %129, %116 : vector<8x512xi1>, vector<8x512xf32>
    %cst_13 = arith.constant 8.000000e+00 : f32
    %131 = vector.broadcast %cst_13 : f32 to vector<8x512xf32>
    %132 = arith.cmpf oeq, %10, %131 : vector<8x512xf32>
    %c32 = arith.constant 32 : index
    %133 = memref.load %arg1[%c32] : memref<44xf32, #tpu.memory_space<smem>>
    %134 = vector.broadcast %133 : f32 to vector<8x512xf32>
    %135 = arith.select %132, %134, %121 : vector<8x512xi1>, vector<8x512xf32>
    %c33 = arith.constant 33 : index
    %136 = memref.load %arg1[%c33] : memref<44xf32, #tpu.memory_space<smem>>
    %137 = vector.broadcast %136 : f32 to vector<8x512xf32>
    %138 = arith.select %132, %137, %124 : vector<8x512xi1>, vector<8x512xf32>
    %c34 = arith.constant 34 : index
    %139 = memref.load %arg1[%c34] : memref<44xf32, #tpu.memory_space<smem>>
    %140 = vector.broadcast %139 : f32 to vector<8x512xf32>
    %141 = arith.select %132, %140, %127 : vector<8x512xi1>, vector<8x512xf32>
    %c35 = arith.constant 35 : index
    %142 = memref.load %arg1[%c35] : memref<44xf32, #tpu.memory_space<smem>>
    %143 = vector.broadcast %142 : f32 to vector<8x512xf32>
    %144 = arith.select %132, %143, %130 : vector<8x512xi1>, vector<8x512xf32>
    %cst_14 = arith.constant 9.000000e+00 : f32
    %145 = vector.broadcast %cst_14 : f32 to vector<8x512xf32>
    %146 = arith.cmpf oeq, %10, %145 : vector<8x512xf32>
    %c36 = arith.constant 36 : index
    %147 = memref.load %arg1[%c36] : memref<44xf32, #tpu.memory_space<smem>>
    %148 = vector.broadcast %147 : f32 to vector<8x512xf32>
    %149 = arith.select %146, %148, %135 : vector<8x512xi1>, vector<8x512xf32>
    %c37 = arith.constant 37 : index
    %150 = memref.load %arg1[%c37] : memref<44xf32, #tpu.memory_space<smem>>
    %151 = vector.broadcast %150 : f32 to vector<8x512xf32>
    %152 = arith.select %146, %151, %138 : vector<8x512xi1>, vector<8x512xf32>
    %c38 = arith.constant 38 : index
    %153 = memref.load %arg1[%c38] : memref<44xf32, #tpu.memory_space<smem>>
    %154 = vector.broadcast %153 : f32 to vector<8x512xf32>
    %155 = arith.select %146, %154, %141 : vector<8x512xi1>, vector<8x512xf32>
    %c39 = arith.constant 39 : index
    %156 = memref.load %arg1[%c39] : memref<44xf32, #tpu.memory_space<smem>>
    %157 = vector.broadcast %156 : f32 to vector<8x512xf32>
    %158 = arith.select %146, %157, %144 : vector<8x512xi1>, vector<8x512xf32>
    %159 = arith.mulf %158, %6 : vector<8x512xf32>
    %160 = arith.addf %159, %155 : vector<8x512xf32>
    %161 = arith.mulf %160, %6 : vector<8x512xf32>
    %162 = arith.addf %161, %152 : vector<8x512xf32>
    %163 = arith.mulf %162, %6 : vector<8x512xf32>
    %164 = arith.addf %163, %149 : vector<8x512xf32>
    %165 = arith.addf %0, %164 : vector<8x512xf32>
    %c0_15 = arith.constant 0 : index
    %c0_16 = arith.constant 0 : index
    %166 = vector.load %arg3[%c0_15, %c0_16] : memref<8x512xf32, #tpu.memory_space<vmem>>, vector<8x512xf32>
    tpu.vector_store %arg3[%c0_15, %c0_16], %165 {strides = array<i32>} : memref<8x512xf32, #tpu.memory_space<vmem>>, vector<8x512xf32>,
    return
  }
  func.func @transform_0(%arg0: i32) -> i32 {
    %c0_i32 = arith.constant 0 : i32
    %c0_i32_0 = arith.constant 0 : i32
    return %c0_i32 : i32
  }
  func.func @transform_1(%arg0: i32) -> (i32, i32) {
    %c0_i32 = arith.constant 0 : i32
    %c0_i32_0 = arith.constant 0 : i32
    return %arg0, %c0_i32 : i32, i32
  }
  func.func @transform_2(%arg0: i32) -> (i32, i32) {
    %c0_i32 = arith.constant 0 : i32
    %c0_i32_0 = arith.constant 0 : i32
    return %arg0, %c0_i32 : i32, i32
  }
}

</mosaic_0001>

<bundles_post_ra>
// kernel: tpu_custom_call.1
= control target key start
LH: loop header
LB: loop body
LE: loop exit
PB: predicated region body
PF: predicated region fallthrough
CT: control target
= control target key end

     0   :  { %7 = vsyncpa [#allocation5], 0  ;;  %s1075_s0 = inlined_call_operand.hbm [shape: f32[44], index: 0, kind: input, shape index: {}]   ;;  %s1076_s1 = inlined_call_operand.hbm [shape: f32[8,512], index: 1, kind: input, shape index: {}]   ;;  %s1077_s2 = inlined_call_operand.hbm [shape: f32[8,512], index: 2, kind: output, shape index: {}]  }
   0x1   :  { %8 = vsyncpa [#allocation3], 0 }
   0x2   :  { %9 = vsyncpa [#allocation4], 0  ;;  %s449_s11 = scalar_lea.hbm %s1075_s0, 16 }
   0x3   :  { %p450_p0 = scmp.ne.s32.totalorder %s1075_s0, %s449_s11  ;;  %p453_p1 = scmp.lt.u32.totalorder %s449_s11, %s1075_s0 }
   0x5   :  { %p455_p2 = pnand %p453_p1, %p450_p0 }
   0x7   :  { %458 = shalt.err (!%p455_p2)
}
   0x8   :  { %s509_s16 = smov [#allocation2]   ;;  %s510_s19 = smov [#allocation6]  }
   0x9   :  { %17 = dma.hbm_to_smem %s1075_s0, 16, %s509_s16, [#allocation5]  }
   0xa   :  { %s24_s20 = sshll.u32 %s510_s19, 4  ;;  %s459_s23 = scalar_lea.hbm %s1076_s1, 512  ;;  %s25_s20 = int_to_ptr.vmem [resolvable:$true] %s24_s20 }
   0xb   :  { %p460_p3 = scmp.ne.s32.totalorder %s1076_s1, %s459_s23  ;;  %p463_p4 = scmp.lt.u32.totalorder %s459_s23, %s1076_s1 }
   0xd   :  { %p465_p5 = pnand %p463_p4, %p460_p3 }
   0xf   :  { %468 = shalt.err (!%p465_p5)
}
  0x10   :  { %s469_s28 = scalar_lea.vmem %s25_s20, 512  ;;  %p474_p7 = scmp.lt.s32.totalorder %s25_s20, %s25_s20 }
  0x11   :  { %p470_p6 = scmp.ne.s32.totalorder %s25_s20, %s469_s28  ;;  %p475_p8 = scmp.lt.s32.totalorder %s469_s28, %s469_s28 }
  0x13   :  { %p476_p9 = por %p475_p8, %p474_p7 }
  0x15   :  { %p477_p10 = pnand %p476_p9, %p470_p6 }
  0x17   :  { %480 = shalt.err (!%p477_p10)
}
  0x18   :  { %27 = dma.hbm_to_vmem [thread:$0]  %s1076_s1, 512, %s25_s20, [#allocation3]  }
  0x19   :  { %503 = dma.done.wait [#allocation5], 16  }
  0x1a   :  { %504 = vsyncadd [#allocation5], 4294967280 }
  0x1b   :  { %505 = dma.done.wait [#allocation3], 512  }
  0x1c   :  { %506 = vsyncadd [#allocation3], 4294966784 }
  0x1d   :  { %34 = sfence }
  0x1e   :  { %v551_v0 = vld [vmem:[#allocation6] sm:$0xff]  ;;  %v553_v1 = vld [vmem:[#allocation6 + $0x8] sm:$0xff]  ;;  %v555_v2 = vld [vmem:[#allocation6 + $0x10] sm:$0xff]  ;;  %s403_s1 = sld [smem:[#allocation2 + $0x28]]  ;;  %s404_s3 = sld [smem:[#allocation2 + $0x29]] }
  0x1f   :  { %v557_v3 = vld [vmem:[#allocation6 + $0x18] sm:$0xff]  ;;  %v399_v4 = vadd.f32 2.2, %v551_v0  ;;  %v400_v5 = vadd.f32 2.2, %v553_v1  ;;  %s75_s30 = sld [smem:[#allocation2]] }
  0x20   :  { %v401_v6 = vadd.f32 2.2, %v555_v2  ;;  %v402_v7 = vadd.f32 2.2, %v557_v3  ;;  %s405_s4 = sld [smem:[#allocation2 + $0x2a]]  ;;  %s406_s5 = sld [smem:[#allocation2 + $0x2b]] }
  0x21   :  { %v43_v8 = vmul.f32 2.5, %v399_v4  ;;  %v44_v9 = vmul.f32 2.5, %v400_v5  ;;  %s407_s6 = sld [smem:[#allocation2 + $0x1]]  ;;  %s408_s7 = sld [smem:[#allocation2 + $0x2]] }
  0x22   :  { %v45_v10 = vmul.f32 2.5, %v401_v6  ;;  %v46_v11 = vmul.f32 2.5, %v402_v7  ;;  %s409_s8 = sld [smem:[#allocation2 + $0x3]]  ;;  %s567_s9 = sld [smem:[#allocation2 + $0x4]] }
  0x23   :  { %v47_v12 = vfloor.f32 %v43_v8  ;;  %v48_v13 = vfloor.f32 %v44_v9  ;;  %s577_s10 = sld [smem:[#allocation2 + $0x5]]  ;;  %s583_s11 = sld [smem:[#allocation2 + $0x6]] }
  0x24   :  { %v49_v14 = vfloor.f32 %v45_v10  ;;  %v50_v15 = vfloor.f32 %v46_v11  ;;  %v64_v26 = vstv %s403_s1  ;;  %v66_v30 = vstv %s404_s3  ;;  %s587_s12 = sld [smem:[#allocation2 + $0x7]]  ;;  %s599_s13 = sld [smem:[#allocation2 + $0x8]] }
  0x25   :  { %v55_v16 = vmax.f32 %v47_v12, 0.0  ;;  %v56_v17 = vmax.f32 %v48_v13, 0.0  ;;  %v573_v24 = vsub.f32 %v43_v8, %v47_v12  ;;  %v575_v25 = vsub.f32 %v44_v9, %v48_v13  ;;  %s616_s14 = sld [smem:[#allocation2 + $0x9]]  ;;  %s625_s15 = sld [smem:[#allocation2 + $0xa]] }
  0x26   :  { %v57_v18 = vmax.f32 %v49_v14, 0.0  ;;  %v58_v19 = vmax.f32 %v50_v15, 0.0  ;;  %v76_v27 = vstv %s75_s30  ;;  %v579_v28 = vsub.f32 %v45_v10, %v49_v14  ;;  %s633_s16 = sld [smem:[#allocation2 + $0xb]]  ;;  %s647_s17 = sld [smem:[#allocation2 + $0xc]] }
  0x27   :  { %v563_v20 = vmin.f32 %v55_v16, 10.0  ;;  %v565_v21 = vmin.f32 %v56_v17, 10.0  ;;  %v581_v29 = vsub.f32 %v46_v11, %v50_v15  ;;  %v68_v31 = vstv %s405_s4  ;;  %s663_s18 = sld [smem:[#allocation2 + $0xd]]  ;;  %s673_s19 = sld [smem:[#allocation2 + $0xe]] }
  0x28   :  { %v569_v22 = vmin.f32 %v57_v18, 10.0  ;;  %v571_v23 = vmin.f32 %v58_v19, 10.0  ;;  %v70_v32 = vstv %s406_s5  ;;  %v82_v33 = vstv %s407_s6  ;;  %s681_s20 = sld [smem:[#allocation2 + $0xf]]  ;;  %s695_s21 = sld [smem:[#allocation2 + $0x10]] }
  0x29   :  { %vm71_vm0 = vcmp.eq.f32.partialorder %v563_v20, 0.0  ;;  %vm72_vm1 = vcmp.eq.f32.partialorder %v565_v21, 0.0  ;;  %v88_v35 = vstv %s408_s7  ;;  %v94_v39 = vstv %s409_s8  ;;  %s711_s22 = sld [smem:[#allocation2 + $0x11]]  ;;  %s721_s23 = sld [smem:[#allocation2 + $0x12]] }
  0x2a   :  { %vm73_vm2 = vcmp.eq.f32.partialorder %v569_v22, 0.0  ;;  %vm74_vm3 = vcmp.eq.f32.partialorder %v571_v23, 0.0  ;;  %v77_v34 = vsel %vm71_vm0, %v76_v27, %v64_v26  ;;  %v78_v36 = vsel %vm72_vm1, %v76_v27, %v64_v26  ;;  %s729_s24 = sld [smem:[#allocation2 + $0x13]]  ;;  %s743_s25 = sld [smem:[#allocation2 + $0x14]] }
  0x2b   :  { %v79_v37 = vsel %vm73_vm2, %v76_v27, %v64_v26  ;;  %v80_v38 = vsel %vm74_vm3, %v76_v27, %v64_v26  ;;  %v83_v40 = vsel %vm71_vm0, %v82_v33, %v66_v30  ;;  %v84_v41 = vsel %vm72_vm1, %v82_v33, %v66_v30  ;;  %s759_s26 = sld [smem:[#allocation2 + $0x15]]  ;;  %s769_s27 = sld [smem:[#allocation2 + $0x16]] }
  0x2c   :  { %v85_v42 = vsel %vm73_vm2, %v82_v33, %v66_v30  ;;  %v86_v43 = vsel %vm74_vm3, %v82_v33, %v66_v30  ;;  %v89_v44 = vsel %vm71_vm0, %v88_v35, %v68_v31  ;;  %v90_v45 = vsel %vm72_vm1, %v88_v35, %v68_v31  ;;  %s777_s28 = sld [smem:[#allocation2 + $0x17]]  ;;  %s791_s0 = sld [smem:[#allocation2 + $0x18]] }
  0x2d   :  { %v91_v46 = vsel %vm73_vm2, %v88_v35, %v68_v31  ;;  %v104_v47 = vstv %s567_s9  ;;  %v92_v48 = vsel %vm74_vm3, %v88_v35, %v68_v31  ;;  %v95_v49 = vsel %vm71_vm0, %v94_v39, %v70_v32  ;;  %s807_s29 = sld [smem:[#allocation2 + $0x19]]  ;;  %s817_s1 = sld [smem:[#allocation2 + $0x1a]] }
  0x2e   :  { %v96_v50 = vsel %vm72_vm1, %v94_v39, %v70_v32  ;;  %vm99_vm4 = vcmp.eq.f32.partialorder %v563_v20, 1.0  ;;  %v97_v51 = vsel %vm73_vm2, %v94_v39, %v70_v32  ;;  %v98_v52 = vsel %vm74_vm3, %v94_v39, %v70_v32  ;;  %s825_s30 = sld [smem:[#allocation2 + $0x1b]]  ;;  %s839_s3 = sld [smem:[#allocation2 + $0x1c]] }
  0x2f   :  { %vm100_vm5 = vcmp.eq.f32.partialorder %v565_v21, 1.0  ;;  %v110_v53 = vstv %s577_s10  ;;  %vm101_vm6 = vcmp.eq.f32.partialorder %v569_v22, 1.0  ;;  %vm102_vm7 = vcmp.eq.f32.partialorder %v571_v23, 1.0  ;;  %s855_s4 = sld [smem:[#allocation2 + $0x1d]]  ;;  %s865_s5 = sld [smem:[#allocation2 + $0x1e]] }
  0x30   :  { %v105_v54 = vsel %vm99_vm4, %v104_v47, %v77_v34  ;;  %v116_v55 = vstv %s583_s11  ;;  %v106_v56 = vsel %vm100_vm5, %v104_v47, %v78_v36  ;;  %v107_v57 = vsel %vm101_vm6, %v104_v47, %v79_v37  ;;  %s873_s6 = sld [smem:[#allocation2 + $0x1f]]  ;;  %s887_s7 = sld [smem:[#allocation2 + $0x20]] }
  0x31   :  { %v108_v58 = vsel %vm102_vm7, %v104_v47, %v80_v38  ;;  %v122_v59 = vstv %s587_s12  ;;  %v111_v60 = vsel %vm99_vm4, %v110_v53, %v83_v40  ;;  %v112_v61 = vsel %vm100_vm5, %v110_v53, %v84_v41  ;;  %s896_s8 = sld [smem:[#allocation2 + $0x21]]  ;;  %s898_s9 = sld [smem:[#allocation2 + $0x22]] }
  0x32   :  { %v113_v62 = vsel %vm101_vm6, %v110_v53, %v85_v42  ;;  %vm127_vm8 = vcmp.eq.f32.partialorder %v563_v20, 2.0  ;;  %v114_v63 = vsel %vm102_vm7, %v110_v53, %v86_v43  ;;  %v117_v4 = vsel %vm99_vm4, %v116_v55, %v89_v44  ;;  %s907_s10 = sld [smem:[#allocation2 + $0x23]]  ;;  %s942_s11 = sld [smem:[#allocation2 + $0x26]] }
  0x33   :  { %v118_v5 = vsel %vm100_vm5, %v116_v55, %v90_v45  ;;  %v132_v6 = vstv %s599_s13  ;;  %v119_v7 = vsel %vm101_vm6, %v116_v55, %v91_v46  ;;  %v120_v8 = vsel %vm102_vm7, %v116_v55, %v92_v48  ;;  %s944_s12 = sld [smem:[#allocation2 + $0x27]]  ;;  %s954_s13 = sld [smem:[#allocation2 + $0x25]] }
  0x34   :  { %v123_v9 = vsel %vm99_vm4, %v122_v59, %v95_v49  ;;  %v124_v10 = vsel %vm100_vm5, %v122_v59, %v96_v50  ;;  %v125_v11 = vsel %vm101_vm6, %v122_v59, %v97_v51  ;;  %v126_v12 = vsel %vm102_vm7, %v122_v59, %v98_v52 }
  0x35   :  { %vm128_vm9 = vcmp.eq.f32.partialorder %v565_v21, 2.0  ;;  %v138_v13 = vstv %s616_s14  ;;  %vm129_vm10 = vcmp.eq.f32.partialorder %v569_v22, 2.0  ;;  %vm130_vm11 = vcmp.eq.f32.partialorder %v571_v23, 2.0  ;;  %s980_s14 = sld [smem:[#allocation2 + $0x24]] }
  0x36   :  { %v133_v14 = vsel %vm127_vm8, %v132_v6, %v105_v54  ;;  %v144_v15 = vstv %s625_s15  ;;  %v134_v16 = vsel %vm128_vm9, %v132_v6, %v106_v56  ;;  %v135_v17 = vsel %vm129_vm10, %v132_v6, %v107_v57  ;;  %s511_s15 = smov [#allocation7]  }
  0x37   :  { %v136_v18 = vsel %vm130_vm11, %v132_v6, %v108_v58  ;;  %v150_v19 = vstv %s633_s16  ;;  %v139_v26 = vsel %vm127_vm8, %v138_v13, %v111_v60  ;;  %v140_v27 = vsel %vm128_vm9, %v138_v13, %v112_v61  ;;  %s389_s16 = sshll.u32 %s511_s15, 4  ;;  %s390_s16 = int_to_ptr.vmem [resolvable:$true] %s389_s16 }
  0x38   :  { %v141_v30 = vsel %vm129_vm10, %v138_v13, %v113_v62  ;;  %vm155_vm12 = vcmp.eq.f32.partialorder %v563_v20, 3.0  ;;  %v142_v31 = vsel %vm130_vm11, %v138_v13, %v114_v63  ;;  %v145_v32 = vsel %vm127_vm8, %v144_v15, %v117_v4  ;;  %p486_p12 = scmp.lt.s32.totalorder %s390_s16, %s390_s16 }
  0x39   :  { %v146_v33 = vsel %vm128_vm9, %v144_v15, %v118_v5  ;;  %v160_v34 = vstv %s647_s17  ;;  %v147_v35 = vsel %vm129_vm10, %v144_v15, %v119_v7  ;;  %v148_v36 = vsel %vm130_vm11, %v144_v15, %v120_v8  ;;  %s481_s17 = scalar_lea.vmem %s390_s16, 512 }
  0x3a   :  { %v151_v37 = vsel %vm127_vm8, %v150_v19, %v123_v9  ;;  %v152_v38 = vsel %vm128_vm9, %v150_v19, %v124_v10  ;;  %v153_v39 = vsel %vm129_vm10, %v150_v19, %v125_v11  ;;  %v154_v40 = vsel %vm130_vm11, %v150_v19, %v126_v12  ;;  %p482_p11 = scmp.ne.s32.totalorder %s390_s16, %s481_s17  ;;  %p487_p13 = scmp.lt.s32.totalorder %s481_s17, %s481_s17 }
  0x3b   :  { %vm156_vm13 = vcmp.eq.f32.partialorder %v565_v21, 3.0  ;;  %v166_v41 = vstv %s663_s18  ;;  %vm157_vm14 = vcmp.eq.f32.partialorder %v569_v22, 3.0  ;;  %vm158_vm15 = vcmp.eq.f32.partialorder %v571_v23, 3.0 }
  0x3c   :  { %v161_v42 = vsel %vm155_vm12, %v160_v34, %v133_v14  ;;  %v172_v43 = vstv %s673_s19  ;;  %v162_v44 = vsel %vm156_vm13, %v160_v34, %v134_v16  ;;  %v163_v45 = vsel %vm157_vm14, %v160_v34, %v135_v17  ;;  %p488_p0 = por %p487_p13, %p486_p12 }
  0x3d   :  { %v164_v46 = vsel %vm158_vm15, %v160_v34, %v136_v18  ;;  %v178_v47 = vstv %s681_s20  ;;  %v167_v48 = vsel %vm155_vm12, %v166_v41, %v139_v26  ;;  %v168_v49 = vsel %vm156_vm13, %v166_v41, %v140_v27 }
  0x3e   :  { %v169_v50 = vsel %vm157_vm14, %v166_v41, %v141_v30  ;;  %vm183_vm0 = vcmp.eq.f32.partialorder %v563_v20, 4.0  ;;  %v170_v51 = vsel %vm158_vm15, %v166_v41, %v142_v31  ;;  %v173_v52 = vsel %vm155_vm12, %v172_v43, %v145_v32  ;;  %p489_p1 = pnand %p488_p0, %p482_p11 }
  0x3f   :  { %v174_v53 = vsel %vm156_vm13, %v172_v43, %v146_v33  ;;  %v188_v54 = vstv %s695_s21  ;;  %v175_v55 = vsel %vm157_vm14, %v172_v43, %v147_v35  ;;  %v176_v56 = vsel %vm158_vm15, %v172_v43, %v148_v36 }
  0x40   :  { %v179_v57 = vsel %vm155_vm12, %v178_v47, %v151_v37  ;;  %v180_v58 = vsel %vm156_vm13, %v178_v47, %v152_v38  ;;  %v181_v59 = vsel %vm157_vm14, %v178_v47, %v153_v39  ;;  %v182_v60 = vsel %vm158_vm15, %v178_v47, %v154_v40 }
  0x41   :  { %vm184_vm1 = vcmp.eq.f32.partialorder %v565_v21, 4.0  ;;  %v194_v61 = vstv %s711_s22  ;;  %vm185_vm2 = vcmp.eq.f32.partialorder %v569_v22, 4.0  ;;  %vm186_vm3 = vcmp.eq.f32.partialorder %v571_v23, 4.0 }
  0x42   :  { %v189_v62 = vsel %vm183_vm0, %v188_v54, %v161_v42  ;;  %v200_v63 = vstv %s721_s23  ;;  %v190_v4 = vsel %vm184_vm1, %v188_v54, %v162_v44  ;;  %v191_v5 = vsel %vm185_vm2, %v188_v54, %v163_v45 }
  0x43   :  { %v192_v6 = vsel %vm186_vm3, %v188_v54, %v164_v46  ;;  %v206_v7 = vstv %s729_s24  ;;  %v195_v8 = vsel %vm183_vm0, %v194_v61, %v167_v48  ;;  %v196_v9 = vsel %vm184_vm1, %v194_v61, %v168_v49 }
  0x44   :  { %v197_v10 = vsel %vm185_vm2, %v194_v61, %v169_v50  ;;  %vm211_vm4 = vcmp.eq.f32.partialorder %v563_v20, 5.0  ;;  %v198_v11 = vsel %vm186_vm3, %v194_v61, %v170_v51  ;;  %v201_v12 = vsel %vm183_vm0, %v200_v63, %v173_v52 }
  0x45   :  { %v202_v13 = vsel %vm184_vm1, %v200_v63, %v174_v53  ;;  %v216_v14 = vstv %s743_s25  ;;  %v203_v15 = vsel %vm185_vm2, %v200_v63, %v175_v55  ;;  %v204_v16 = vsel %vm186_vm3, %v200_v63, %v176_v56 }
  0x46   :  { %v207_v17 = vsel %vm183_vm0, %v206_v7, %v179_v57  ;;  %v208_v18 = vsel %vm184_vm1, %v206_v7, %v180_v58  ;;  %v209_v19 = vsel %vm185_vm2, %v206_v7, %v181_v59  ;;  %v210_v26 = vsel %vm186_vm3, %v206_v7, %v182_v60 }
  0x47   :  { %vm212_vm5 = vcmp.eq.f32.partialorder %v565_v21, 5.0  ;;  %v222_v27 = vstv %s759_s26  ;;  %vm213_vm6 = vcmp.eq.f32.partialorder %v569_v22, 5.0  ;;  %vm214_vm7 = vcmp.eq.f32.partialorder %v571_v23, 5.0 }
  0x48   :  { %v217_v30 = vsel %vm211_vm4, %v216_v14, %v189_v62  ;;  %v228_v31 = vstv %s769_s27  ;;  %v218_v32 = vsel %vm212_vm5, %v216_v14, %v190_v4  ;;  %v219_v33 = vsel %vm213_vm6, %v216_v14, %v191_v5 }
  0x49   :  { %v220_v34 = vsel %vm214_vm7, %v216_v14, %v192_v6  ;;  %v234_v35 = vstv %s777_s28  ;;  %v223_v36 = vsel %vm211_vm4, %v222_v27, %v195_v8  ;;  %v224_v37 = vsel %vm212_vm5, %v222_v27, %v196_v9 }
  0x4a   :  { %v225_v38 = vsel %vm213_vm6, %v222_v27, %v197_v10  ;;  %vm239_vm8 = vcmp.eq.f32.partialorder %v563_v20, 6.0  ;;  %v226_v39 = vsel %vm214_vm7, %v222_v27, %v198_v11  ;;  %v229_v40 = vsel %vm211_vm4, %v228_v31, %v201_v12 }
  0x4b   :  { %v230_v41 = vsel %vm212_vm5, %v228_v31, %v202_v13  ;;  %v244_v42 = vstv %s791_s0  ;;  %v231_v43 = vsel %vm213_vm6, %v228_v31, %v203_v15  ;;  %v232_v44 = vsel %vm214_vm7, %v228_v31, %v204_v16 }
  0x4c   :  { %v235_v45 = vsel %vm211_vm4, %v234_v35, %v207_v17  ;;  %v236_v46 = vsel %vm212_vm5, %v234_v35, %v208_v18  ;;  %v237_v47 = vsel %vm213_vm6, %v234_v35, %v209_v19  ;;  %v238_v48 = vsel %vm214_vm7, %v234_v35, %v210_v26 }
  0x4d   :  { %vm240_vm9 = vcmp.eq.f32.partialorder %v565_v21, 6.0  ;;  %v250_v49 = vstv %s807_s29  ;;  %vm241_vm10 = vcmp.eq.f32.partialorder %v569_v22, 6.0  ;;  %vm242_vm11 = vcmp.eq.f32.partialorder %v571_v23, 6.0 }
  0x4e   :  { %v245_v50 = vsel %vm239_vm8, %v244_v42, %v217_v30  ;;  %v256_v51 = vstv %s817_s1  ;;  %v246_v52 = vsel %vm240_vm9, %v244_v42, %v218_v32  ;;  %v247_v53 = vsel %vm241_vm10, %v244_v42, %v219_v33 }
  0x4f   :  { %v248_v54 = vsel %vm242_vm11, %v244_v42, %v220_v34  ;;  %v262_v55 = vstv %s825_s30  ;;  %v251_v56 = vsel %vm239_vm8, %v250_v49, %v223_v36  ;;  %v252_v57 = vsel %vm240_vm9, %v250_v49, %v224_v37 }
  0x50   :  { %v253_v58 = vsel %vm241_vm10, %v250_v49, %v225_v38  ;;  %vm267_vm12 = vcmp.eq.f32.partialorder %v563_v20, 7.0  ;;  %v254_v59 = vsel %vm242_vm11, %v250_v49, %v226_v39  ;;  %v257_v60 = vsel %vm239_vm8, %v256_v51, %v229_v40 }
  0x51   :  { %v258_v61 = vsel %vm240_vm9, %v256_v51, %v230_v41  ;;  %v272_v62 = vstv %s839_s3  ;;  %v259_v63 = vsel %vm241_vm10, %v256_v51, %v231_v43  ;;  %v260_v4 = vsel %vm242_vm11, %v256_v51, %v232_v44 }
  0x52   :  { %v263_v5 = vsel %vm239_vm8, %v262_v55, %v235_v45  ;;  %v264_v6 = vsel %vm240_vm9, %v262_v55, %v236_v46  ;;  %v265_v7 = vsel %vm241_vm10, %v262_v55, %v237_v47  ;;  %v266_v8 = vsel %vm242_vm11, %v262_v55, %v238_v48 }
  0x53   :  { %vm268_vm13 = vcmp.eq.f32.partialorder %v565_v21, 7.0  ;;  %v278_v9 = vstv %s855_s4  ;;  %vm269_vm14 = vcmp.eq.f32.partialorder %v569_v22, 7.0  ;;  %vm270_vm15 = vcmp.eq.f32.partialorder %v571_v23, 7.0 }
  0x54   :  { %v273_v10 = vsel %vm267_vm12, %v272_v62, %v245_v50  ;;  %v284_v11 = vstv %s865_s5  ;;  %v274_v12 = vsel %vm268_vm13, %v272_v62, %v246_v52  ;;  %v275_v13 = vsel %vm269_vm14, %v272_v62, %v247_v53 }
  0x55   :  { %v276_v14 = vsel %vm270_vm15, %v272_v62, %v248_v54  ;;  %v290_v15 = vstv %s873_s6  ;;  %v279_v16 = vsel %vm267_vm12, %v278_v9, %v251_v56  ;;  %v280_v17 = vsel %vm268_vm13, %v278_v9, %v252_v57 }
  0x56   :  { %v281_v18 = vsel %vm269_vm14, %v278_v9, %v253_v58  ;;  %vm295_vm0 = vcmp.eq.f32.partialorder %v563_v20, 8.0  ;;  %v282_v19 = vsel %vm270_vm15, %v278_v9, %v254_v59  ;;  %v285_v26 = vsel %vm267_vm12, %v284_v11, %v257_v60 }
  0x57   :  { %v286_v27 = vsel %vm268_vm13, %v284_v11, %v258_v61  ;;  %v287_v30 = vsel %vm269_vm14, %v284_v11, %v259_v63  ;;  %v288_v31 = vsel %vm270_vm15, %v284_v11, %v260_v4  ;;  %v300_v32 = vstv %s887_s7 }
  0x58   :  { %v306_v33 = vstv %s896_s8  ;;  %v312_v34 = vstv %s898_s9  ;;  %v291_v35 = vsel %vm267_vm12, %v290_v15, %v263_v5  ;;  %v292_v36 = vsel %vm268_vm13, %v290_v15, %v264_v6 }
  0x59   :  { %v293_v37 = vsel %vm269_vm14, %v290_v15, %v265_v7  ;;  %v318_v38 = vstv %s907_s10  ;;  %v294_v39 = vsel %vm270_vm15, %v290_v15, %v266_v8  ;;  %vm296_vm1 = vcmp.eq.f32.partialorder %v565_v21, 8.0 }
  0x5a   :  { %vm297_vm2 = vcmp.eq.f32.partialorder %v569_v22, 8.0  ;;  %vm298_vm3 = vcmp.eq.f32.partialorder %v571_v23, 8.0  ;;  %v301_v40 = vsel %vm295_vm0, %v300_v32, %v273_v10  ;;  %v307_v41 = vsel %vm295_vm0, %v306_v33, %v279_v16 }
  0x5b   :  { %v313_v42 = vsel %vm295_vm0, %v312_v34, %v285_v26  ;;  %vm323_vm4 = vcmp.eq.f32.partialorder %v563_v20, 9.0  ;;  %v314_v43 = vsel %vm296_vm1, %v312_v34, %v286_v27  ;;  %v315_v44 = vsel %vm297_vm2, %v312_v34, %v287_v30 }
  0x5c   :  { %v316_v45 = vsel %vm298_vm3, %v312_v34, %v288_v31  ;;  %v319_v46 = vsel %vm295_vm0, %v318_v38, %v291_v35  ;;  %v320_v47 = vsel %vm296_vm1, %v318_v38, %v292_v36  ;;  %v321_v48 = vsel %vm297_vm2, %v318_v38, %v293_v37 }
  0x5d   :  { %v322_v49 = vsel %vm298_vm3, %v318_v38, %v294_v39  ;;  %vm324_vm5 = vcmp.eq.f32.partialorder %v565_v21, 9.0  ;;  %vm325_vm6 = vcmp.eq.f32.partialorder %v569_v22, 9.0  ;;  %vm326_vm7 = vcmp.eq.f32.partialorder %v571_v23, 9.0 }
  0x5e   :  { %v340_v50 = vstv %s942_s11  ;;  %v346_v51 = vstv %s944_s12  ;;  %v308_v52 = vsel %vm296_vm1, %v306_v33, %v280_v17  ;;  %v309_v53 = vsel %vm297_vm2, %v306_v33, %v281_v18 }
  0x5f   :  { %v310_v54 = vsel %vm298_vm3, %v306_v33, %v282_v19  ;;  %v334_v55 = vstv %s954_s13  ;;  %v341_v56 = vsel %vm323_vm4, %v340_v50, %v313_v42  ;;  %v342_v57 = vsel %vm324_vm5, %v340_v50, %v314_v43 }
  0x60   :  { %v343_v58 = vsel %vm325_vm6, %v340_v50, %v315_v44  ;;  %v344_v59 = vsel %vm326_vm7, %v340_v50, %v316_v45  ;;  %v347_v60 = vsel %vm323_vm4, %v346_v51, %v319_v46  ;;  %v348_v61 = vsel %vm324_vm5, %v346_v51, %v320_v47 }
  0x61   :  { %v349_v62 = vsel %vm325_vm6, %v346_v51, %v321_v48  ;;  %v350_v63 = vsel %vm326_vm7, %v346_v51, %v322_v49  ;;  %v351_v4 = vmul.f32 %v347_v60, %v573_v24  ;;  %v352_v5 = vmul.f32 %v348_v61, %v575_v25 }
  0x62   :  { %v353_v6 = vmul.f32 %v349_v62, %v579_v28  ;;  %v354_v7 = vmul.f32 %v350_v63, %v581_v29  ;;  %v302_v8 = vsel %vm296_vm1, %v300_v32, %v274_v12  ;;  %v303_v9 = vsel %vm297_vm2, %v300_v32, %v275_v13 }
  0x63   :  { %v304_v10 = vsel %vm298_vm3, %v300_v32, %v276_v14  ;;  %v328_v11 = vstv %s980_s14  ;;  %v355_v15 = vadd.f32 %v351_v4, %v341_v56  ;;  %v356_v16 = vadd.f32 %v352_v5, %v342_v57 }
  0x64   :  { %v357_v17 = vadd.f32 %v353_v6, %v343_v58  ;;  %v358_v18 = vadd.f32 %v354_v7, %v344_v59  ;;  %v335_v19 = vsel %vm323_vm4, %v334_v55, %v307_v41  ;;  %v336_v26 = vsel %vm324_vm5, %v334_v55, %v308_v52 }
  0x65   :  { %v337_v12 = vsel %vm325_vm6, %v334_v55, %v309_v53  ;;  %v338_v13 = vsel %vm326_vm7, %v334_v55, %v310_v54  ;;  %v359_v27 = vmul.f32 %v355_v15, %v573_v24  ;;  %v360_v14 = vmul.f32 %v356_v16, %v575_v25 }
  0x66   :  { %v361_v30 = vmul.f32 %v357_v17, %v579_v28  ;;  %v362_v31 = vmul.f32 %v358_v18, %v581_v29  ;;  %v329_v36 = vsel %vm323_vm4, %v328_v11, %v301_v40  ;;  %v330_v37 = vsel %vm324_vm5, %v328_v11, %v302_v8 }
  0x67   :  { %v363_v32 = vadd.f32 %v359_v27, %v335_v19  ;;  %v364_v33 = vadd.f32 %v360_v14, %v336_v26  ;;  %v331_v38 = vsel %vm325_vm6, %v328_v11, %v303_v9  ;;  %v332_v39 = vsel %vm326_vm7, %v328_v11, %v304_v10 }
  0x68   :  { %v365_v34 = vadd.f32 %v361_v30, %v337_v12  ;;  %v366_v35 = vadd.f32 %v362_v31, %v338_v13 }
  0x69   :  { %v367_v41 = vmul.f32 %v363_v32, %v573_v24  ;;  %v368_v42 = vmul.f32 %v364_v33, %v575_v25 }
  0x6a   :  { %v369_v43 = vmul.f32 %v365_v34, %v579_v28  ;;  %v370_v44 = vmul.f32 %v366_v35, %v581_v29 }
  0x6b   :  { %v371_v20 = vadd.f32 %v367_v41, %v329_v36  ;;  %v372_v40 = vadd.f32 %v368_v42, %v330_v37 }
  0x6c   :  { %v373_v21 = vadd.f32 %v369_v43, %v331_v38  ;;  %v374_v45 = vadd.f32 %v370_v44, %v332_v39 }
  0x6d   :  { %v375_v22 = vadd.f32 %v371_v20, %v551_v0  ;;  %v376_v46 = vadd.f32 %v372_v40, %v553_v1 }
  0x6e   :  { %v377_v23 = vadd.f32 %v373_v21, %v555_v2  ;;  %v378_v24 = vadd.f32 %v374_v45, %v557_v3 }
  0x6f   :  { %379 = vst [vmem:[#allocation7] sm:$0xff] %v375_v22  ;;  %380 = vst [vmem:[#allocation7 + $0x8] sm:$0xff] %v376_v46 }
  0x70   :  { %381 = vst [vmem:[#allocation7 + $0x10] sm:$0xff] %v377_v23  ;;  %382 = vst [vmem:[#allocation7 + $0x18] sm:$0xff] %v378_v24 }
  0x71   :  { %492 = shalt.err (!%p489_p1)
}
  0x72   :  { %s493_s20 = scalar_lea.hbm %s1077_s2, 512 }
  0x73   :  { %p494_p2 = scmp.ne.s32.totalorder %s1077_s2, %s493_s20  ;;  %p497_p3 = scmp.lt.u32.totalorder %s493_s20, %s1077_s2 }
  0x75   :  { %p499_p4 = pnand %p497_p3, %p494_p2 }
  0x77   :  { %502 = shalt.err (!%p499_p4)
}
  0x78   :  { %392 = dma.vmem_to_hbm [thread:$0]  %s390_s16, 512, %s1077_s2, [#allocation4]  }
  0x79   :  { %507 = dma.done.wait [#allocation4], 512  }
  0x7a   :  { %508 = vsyncadd [#allocation4], 4294966784 }
  0x7b   :  { %396 = vsyncpa [#allocation3], 1 }
  0x7c   :  { %397 = vsyncpa [#allocation4], 1 }
  0x7d   :  { %398 = vsyncpa [#allocation5], 1 }

</bundles_post_ra>
